<compile_context>
chip_gen: v6e
topology: v6e:2x2x1
jax: 0.10.0
libtpu: 0.0.40
codegen_flags: <defaults>
</compile_context>

<pallas_src>
import jax
import jax.numpy as jnp
from jax.experimental import pallas as pl
from jax.experimental.pallas import tpu as pltpu


def _round_up(x, m):
    return (x + m - 1) // m * m


def _pick_tv(v, max_block_v):
    """Largest multiple of 128 that divides V and is <= max_block_v (else full V)."""
    if v % 128 != 0:
        return v
    tv = min(_round_up(max(max_block_v, 1), 128), v)
    tv = (tv // 128) * 128
    while v % tv != 0:
        tv -= 128
    return max(tv, 128)


def _vmem_bytes(tm, tv, hdim, citem):
    """Conservative working-set estimate (lane/sublane padded, double-buffered)."""
    def arr(r, c, isz):
        return _round_up(max(r, 1), 8) * _round_up(max(c, 1), 128) * isz
    total = 0
    total += 2 * arr(tm, hdim, citem)        # x tile (double buffered)
    total += 2 * arr(hdim, hdim, citem)      # dense W
    total += 2 * arr(1, hdim, 4)             # dense bias
    total += 2 * arr(hdim, tv, citem)        # lm_head tile (streamed)
    total += 2 * 2 * arr(tm, 1, 4)           # labels + active tiles
    total += 2 * arr(8, 128, 4)              # partial-sum output slab
    total += arr(tm, hdim, citem)            # h scratch
    total += 3 * arr(tm, 1, 4)               # m / l / sel scratch
    total += 3 * arr(tm, tv, 4)              # logits tile + elementwise temps
    return total


def _loss_kernel(x_ref, wd_ref, bd_ref, wlm_ref, lbl_ref, act_ref, out_ref,
                 h_sc, m_sc, l_sc, sel_sc):
    # Grid: (row tiles [parallel], vocab tiles [arbitrary, online reduction]).
    j = pl.program_id(1)

    @pl.when(j == 0)
    def _init():
        # dense + tanh once per row tile: MXU matmul with f32 accumulation,
        # bias add / tanh in f32 on VPU/EUP.
        h = jnp.dot(x_ref[...], wd_ref[...], preferred_element_type=jnp.float32)
        h = jnp.tanh(h + bd_ref[...])
        h_sc[...] = h.astype(h_sc.dtype)
        m_sc[...] = jnp.full(m_sc.shape, -jnp.inf, jnp.float32)
        l_sc[...] = jnp.zeros(l_sc.shape, jnp.float32)
        sel_sc[...] = jnp.zeros(sel_sc.shape, jnp.float32)

    # lm_head vocab tile: (TM, H) @ (H, TV) -> f32 logits tile (never hits HBM).
    logits = jnp.dot(h_sc[...], wlm_ref[...], preferred_element_type=jnp.float32)
    tm, tv = logits.shape

    # Label gather for this vocab tile (the label falls in exactly one tile).
    col = jax.lax.broadcasted_iota(jnp.int32, (tm, tv), 1) + j * tv
    sel_sc[...] += jnp.sum(jnp.where(col == lbl_ref[...], logits, 0.0),
                           axis=-1, keepdims=True)

    # Online logsumexp update (single shifted-exp pass per tile).
    m_old = m_sc[...]
    m_new = jnp.maximum(m_old, jnp.max(logits, axis=-1, keepdims=True))
    p = jnp.exp(logits - m_new)
    l_sc[...] = l_sc[...] * jnp.exp(m_old - m_new) + jnp.sum(p, axis=-1, keepdims=True)
    m_sc[...] = m_new

    @pl.when(j == pl.num_programs(1) - 1)
    def _finalize():
        # Masked NLL per token, reduced to a per-tile partial sum; emitted as a
        # single lane-dense (8, 128) slab (value in [0, 0], zeros elsewhere).
        nll = (m_sc[...] + jnp.log(l_sc[...]) - sel_sc[...]) * act_ref[...]
        part = jnp.sum(nll, axis=0, keepdims=True)                     # (1, 1)
        row = jax.lax.broadcasted_iota(jnp.int32, (8, 128), 0)
        lane = jax.lax.broadcasted_iota(jnp.int32, (8, 128), 1)
        out_ref[0] = jnp.where((row == 0) & (lane == 0), part, 0.0)


def seq2seq_loss_pallas(decoder_out, target_ids, target_mask, dense_w, dense_b,
                        lm_head_w, *, block_rows=512, block_cols=2048,
                        compute_dtype=jnp.float32):
    """Fused dense->tanh->lm_head->cross-entropy of Seq2Seq's training forward.

    decoder_out: (B, T, H)  decoder output already permuted to batch-major
    target_ids:  (B, T)     int token ids
    target_mask: (B, T)     nonzero = real token
    dense_w:     (H, H)     stored transposed vs. torch (x @ W)
    dense_b:     (H,)
    lm_head_w:   (H, V)     tied word-embedding matrix, transposed (h @ W)
    Returns (loss_mean, loss_sum, active_count) matching
            (loss, loss * active.sum(), active.sum()) of the PyTorch module.
    """
    b, t, hdim = decoder_out.shape
    v = lm_head_w.shape[1]
    citem = jnp.dtype(compute_dtype).itemsize

    # Shift / flatten (cheap glue, plain JAX).
    x = decoder_out[:, :-1, :].reshape(-1, hdim)                      # (N, H)
    labels = target_ids[:, 1:].reshape(-1).astype(jnp.int32)          # (N,)
    active = (target_mask[:, 1:].reshape(-1) != 0) & (labels != -1)   # ignore_index=-1
    n = x.shape[0]

    # bf16 packs 16 rows per sublane-packed vreg on v5e -> align TM to 16 for bf16.
    align = 16 if jnp.dtype(compute_dtype) == jnp.dtype(jnp.bfloat16) else 8

    tv = _pick_tv(v, block_cols)
    tm = max(align, _round_up(min(block_rows, max(n, 1)), align))

    # Keep the working set comfortably inside v7x's 64 MiB physical VMEM.
    budget_cap = 40 << 20
    while _vmem_bytes(tm, tv, hdim, citem) > budget_cap and tm > align:
        tm = max(align, (tm // 2 // align) * align)

    n_pad = _round_up(n, tm)
    pad = n_pad - n
    # Keep the explicit zero-pad of x: padded rows produce finite logits that are
    # zeroed by act == 0 (dropping the pad would need an in-kernel row-validity mask).
    x = jnp.pad(x, ((0, pad), (0, 0)))
    labels_p = jnp.pad(labels, (0, pad)).reshape(n_pad, 1)
    act_f = jnp.pad(active.astype(jnp.float32), (0, pad)).reshape(n_pad, 1)

    # No-ops when the caller already stores weights/activations in compute_dtype
    # (hoist the weight cast out of the training step for real workloads).
    x_c = x.astype(compute_dtype)
    wd_c = dense_w.astype(compute_dtype)
    wlm_c = lm_head_w.astype(compute_dtype)
    bd_2d = dense_b.reshape(1, hdim).astype(jnp.float32)

    grid_m = n_pad // tm
    grid_v = v // tv
    vmem = pltpu.MemorySpace.VMEM

    vmem_limit = int(min(64 << 20,
                         max(32 << 20, 2 * _vmem_bytes(tm, tv, hdim, citem))))

    cost = pl.CostEstimate(
        flops=int(2 * n_pad * hdim * hdim + 2 * n_pad * hdim * v),
        transcendentals=int(n_pad * (hdim + v)),
        bytes_accessed=int(
            x_c.size * citem + wd_c.size * citem
            + grid_m * wlm_c.size * citem            # lm_head streamed per row tile
            + bd_2d.size * 4 + labels_p.size * 4 + act_f.size * 4
            + grid_m * 8 * 128 * 4),
    )

    loss_parts = pl.pallas_call(
        _loss_kernel,
        out_shape=jax.ShapeDtypeStruct((grid_m, 8, 128), jnp.float32),
        grid=(grid_m, grid_v),
        in_specs=[
            pl.BlockSpec((tm, hdim), lambda i, j: (i, 0), memory_space=vmem),   # x tile
            pl.BlockSpec((hdim, hdim), lambda i, j: (0, 0), memory_space=vmem), # dense W (resident)
            pl.BlockSpec((1, hdim), lambda i, j: (0, 0), memory_space=vmem),    # dense b (resident)
            pl.BlockSpec((hdim, tv), lambda i, j: (0, j), memory_space=vmem),   # lm_head tile (streamed)
            pl.BlockSpec((tm, 1), lambda i, j: (i, 0), memory_space=vmem),      # labels tile
            pl.BlockSpec((tm, 1), lambda i, j: (i, 0), memory_space=vmem),      # active tile
        ],
        out_specs=pl.BlockSpec((1, 8, 128), lambda i, j: (i, 0, 0), memory_space=vmem),
        scratch_shapes=[
            pltpu.VMEM((tm, hdim), compute_dtype),   # post-tanh hidden states
            pltpu.VMEM((tm, 1), jnp.float32),        # running max
            pltpu.VMEM((tm, 1), jnp.float32),        # running sum of exp
            pltpu.VMEM((tm, 1), jnp.float32),        # gathered label logit
        ],
        compiler_params=pltpu.CompilerParams(
            dimension_semantics=("parallel", "arbitrary"),
            vmem_limit_bytes=vmem_limit),
        cost_estimate=cost,
    )(x_c, wd_c, bd_2d, wlm_c, labels_p, act_f)

    total = jnp.sum(loss_parts)                      # padded rows contribute exactly 0
    count = jnp.sum(active).astype(jnp.int32)
    # NOTE: PyTorch CE with every token ignored would return NaN; guard with max(count, 1).
    mean = total / jnp.maximum(count, 1)
    return mean, total, count


def _reference(decoder_out, target_ids, target_mask, dense_w, dense_b, lm_head_w):
    h = jnp.tanh(decoder_out @ dense_w + dense_b)        # (B, T, H)
    logits = h @ lm_head_w                               # (B, T, V)
    shift_logits = logits[:, :-1, :]
    shift_labels = target_ids[:, 1:]
    active = (target_mask[:, 1:] != 0) & (shift_labels != -1)
    logp = jax.nn.log_softmax(shift_logits, axis=-1)
    nll = -jnp.take_along_axis(logp, shift_labels[..., None], axis=-1)[..., 0]
    nll = jnp.where(active, nll, 0.0)
    count = jnp.sum(active).astype(jnp.int32)
    total = jnp.sum(nll)
    return total / count, total, count


if __name__ == "__main__":
    hidden = 32       # config.hidden_size
    vocab = 256       # config.vocab_size (multiple of 128 -> 2 vocab tiles below)
    batch = 2
    tgt_len = 8

    key = jax.random.PRNGKey(0)
    k_out, k_wd, k_bd, k_emb, k_ids = jax.random.split(key, 5)

    # Stand-in for the transformer decoder output, already batch-major (B, T, H).
    dec_out = jax.random.normal(k_out, (batch, tgt_len, hidden), dtype=jnp.float32)
    target_ids = jax.random.randint(k_ids, (batch, tgt_len), 0, vocab)
    target_mask = jnp.array([[1] * tgt_len,
                             [1] * (tgt_len - 2) + [0, 0]], dtype=jnp.int32)

    bound = 1.0 / float(hidden ** 0.5)
    dense_w = jax.random.uniform(k_wd, (hidden, hidden), jnp.float32, -bound, bound)
    dense_b = jax.random.uniform(k_bd, (hidden,), jnp.float32, -bound, bound)
    emb = jax.random.normal(k_emb, (vocab, hidden), dtype=jnp.float32)  # tied word embeddings
    lm_head_w = emb.T                                                    # (H, V)

    ref_mean, ref_total, ref_count = _reference(
        dec_out, target_ids, target_mask, dense_w, dense_b, lm_head_w)

    # f32 path: block_rows=8 / block_cols=128 -> grid (2 row tiles, 2 vocab tiles),
    # exercising both the row pipeline and the online logsumexp across vocab tiles.
    mean, total, count = seq2seq_loss_pallas(
        dec_out, target_ids, target_mask, dense_w, dense_b, lm_head_w,
        block_rows=8, block_cols=128, compute_dtype=jnp.float32)
    jax.block_until_ready(mean)

    assert int(count) == int(ref_count)
    assert bool(jnp.isfinite(mean)) and float(mean) > 0.0
    assert jnp.allclose(mean, ref_mean, atol=2e-2, rtol=2e-2)
    assert jnp.allclose(total, ref_total, atol=2e-1, rtol=2e-2)

    # bf16 MXU-operand path: weights pre-cast once (hoisted cast), f32 accumulation,
    # f32 VPU/EUP math; TM auto-aligned to 16.  Looser tolerance.
    dense_w_bf = dense_w.astype(jnp.bfloat16)
    lm_head_w_bf = lm_head_w.astype(jnp.bfloat16)
    mean_bf, total_bf, count_bf = seq2seq_loss_pallas(
        dec_out, target_ids, target_mask, dense_w_bf, dense_b, lm_head_w_bf,
        block_rows=16, block_cols=128, compute_dtype=jnp.bfloat16)
    jax.block_until_ready(mean_bf)

    assert int(count_bf) == int(ref_count)
    assert jnp.allclose(mean_bf, ref_mean, atol=1e-1, rtol=1e-1)
    assert jnp.allclose(total_bf, ref_total, atol=1.5, rtol=1e-1)

    print("KERNEL_OK")
</pallas_src>

<mosaic_0001>
module attributes {stable_mosaic.version = 11 : i64} {
  func.func @_loss_kernel(%arg0: i32, %arg1: i32, %arg2: memref<8x32xf32, #tpu.memory_space<vmem>>, %arg3: memref<32x32xf32, #tpu.memory_space<vmem>>, %arg4: memref<1x32xf32, #tpu.memory_space<vmem>>, %arg5: memref<32x128xf32, #tpu.memory_space<vmem>>, %arg6: memref<8x1xi32, #tpu.memory_space<vmem>>, %arg7: memref<8x1xf32, #tpu.memory_space<vmem>>, %arg8: memref<1x8x128xf32, #tpu.memory_space<vmem>>, %arg9: memref<8x32xf32, #tpu.memory_space<vmem>>, %arg10: memref<8x1xf32, #tpu.memory_space<vmem>>, %arg11: memref<8x1xf32, #tpu.memory_space<vmem>>, %arg12: memref<8x1xf32, #tpu.memory_space<vmem>>) attributes {dimension_semantics = [#tpu.dimension_semantics<parallel>, #tpu.dimension_semantics<arbitrary>], iteration_bounds = array<i64: 2, 2>, scalar_prefetch = 0 : i64, scratch_operands = 4 : i64, tpu.core_type = #tpu.core_type<tc>, window_params = [{transform_indices = @transform_0, window_bounds = array<i64: 8, 32>}, {pipeline_mode = #tpu.pipeline_mode<synchronous>, transform_indices = @transform_1, window_bounds = array<i64: 32, 32>}, {pipeline_mode = #tpu.pipeline_mode<synchronous>, transform_indices = @transform_2, window_bounds = array<i64: 1, 32>}, {transform_indices = @transform_3, window_bounds = array<i64: 32, 128>}, {transform_indices = @transform_4, window_bounds = array<i64: 8, 1>}, {transform_indices = @transform_5, window_bounds = array<i64: 8, 1>}, {transform_indices = @transform_6, window_bounds = array<i64: 1, 8, 128>}]} {
    %c0_i32 = arith.constant 0 : i32
    %0 = arith.cmpi eq, %arg1, %c0_i32 : i32
    %1 = arith.extui %0 : i1 to i32
    %c0_i32_0 = arith.constant 0 : i32
    %2 = arith.cmpi ne, %1, %c0_i32_0 : i32
    scf.if %2 {
      %c0_23 = arith.constant 0 : index
      %c0_24 = arith.constant 0 : index
      %39 = vector.load %arg2[%c0_23, %c0_24] : memref<8x32xf32, #tpu.memory_space<vmem>>, vector<8x32xf32>
      %c0_25 = arith.constant 0 : index
      %c0_26 = arith.constant 0 : index
      %40 = vector.load %arg3[%c0_25, %c0_26] : memref<32x32xf32, #tpu.memory_space<vmem>>, vector<32x32xf32>
      %cst_27 = arith.constant dense<0.000000e+00> : vector<8x32xf32>
      %41 = tpu.matmul %39, %40, %cst_27 {dimension_numbers = #tpu.dot_dimension_numbers<[1], [0], [0], [1], [0, 0, 1, 1], [], []>} : vector<8x32xf32>, vector<32x32xf32>, vector<8x32xf32> -> vector<8x32xf32>
      %c0_28 = arith.constant 0 : index
      %c0_29 = arith.constant 0 : index
      %42 = vector.load %arg4[%c0_28, %c0_29] : memref<1x32xf32, #tpu.memory_space<vmem>>, vector<1x32xf32>
      %43 = vector.broadcast %42 : vector<1x32xf32> to vector<8x32xf32>
      %44 = arith.addf %41, %43 : vector<8x32xf32>
      %45 = math.tanh %44 : vector<8x32xf32>
      %c0_30 = arith.constant 0 : index
      %c0_31 = arith.constant 0 : index
      %46 = vector.load %arg9[%c0_30, %c0_31] : memref<8x32xf32, #tpu.memory_space<vmem>>, vector<8x32xf32>
      tpu.vector_store %arg9[%c0_30, %c0_31], %45 {strides = array<i32>} : memref<8x32xf32, #tpu.memory_space<vmem>>, vector<8x32xf32>,
      %cst_32 = arith.constant 0xFF800000 : f32
      %47 = vector.broadcast %cst_32 : f32 to vector<8x1xf32>
      %c0_33 = arith.constant 0 : index
      %c0_34 = arith.constant 0 : index
      %48 = vector.load %arg10[%c0_33, %c0_34] : memref<8x1xf32, #tpu.memory_space<vmem>>, vector<8x1xf32>
      tpu.vector_store %arg10[%c0_33, %c0_34], %47 {strides = array<i32>} : memref<8x1xf32, #tpu.memory_space<vmem>>, vector<8x1xf32>,
      %cst_35 = arith.constant 0.000000e+00 : f32
      %49 = vector.broadcast %cst_35 : f32 to vector<8x1xf32>
      %c0_36 = arith.constant 0 : index
      %c0_37 = arith.constant 0 : index
      %50 = vector.load %arg11[%c0_36, %c0_37] : memref<8x1xf32, #tpu.memory_space<vmem>>, vector<8x1xf32>
      tpu.vector_store %arg11[%c0_36, %c0_37], %49 {strides = array<i32>} : memref<8x1xf32, #tpu.memory_space<vmem>>, vector<8x1xf32>,
      %cst_38 = arith.constant 0.000000e+00 : f32
      %51 = vector.broadcast %cst_38 : f32 to vector<8x1xf32>
      %c0_39 = arith.constant 0 : index
      %c0_40 = arith.constant 0 : index
      %52 = vector.load %arg12[%c0_39, %c0_40] : memref<8x1xf32, #tpu.memory_space<vmem>>, vector<8x1xf32>
      tpu.vector_store %arg12[%c0_39, %c0_40], %51 {strides = array<i32>} : memref<8x1xf32, #tpu.memory_space<vmem>>, vector<8x1xf32>,
    } else {
    }
    %c0 = arith.constant 0 : index
    %c0_1 = arith.constant 0 : index
    %3 = vector.load %arg9[%c0, %c0_1] : memref<8x32xf32, #tpu.memory_space<vmem>>, vector<8x32xf32>
    %c0_2 = arith.constant 0 : index
    %c0_3 = arith.constant 0 : index
    %4 = vector.load %arg5[%c0_2, %c0_3] : memref<32x128xf32, #tpu.memory_space<vmem>>, vector<32x128xf32>
    %cst = arith.constant dense<0.000000e+00> : vector<8x128xf32>
    %5 = tpu.matmul %3, %4, %cst {dimension_numbers = #tpu.dot_dimension_numbers<[1], [0], [0], [1], [0, 0, 1, 1], [], []>} : vector<8x32xf32>, vector<32x128xf32>, vector<8x128xf32> -> vector<8x128xf32>
    %6 = tpu.iota {dimensions = array<i32: 1>} : vector<8x128xi32>
    %c128_i32 = arith.constant 128 : i32
    %7 = arith.muli %arg1, %c128_i32 : i32
    %8 = vector.broadcast %7 : i32 to vector<8x128xi32>
    %9 = arith.addi %6, %8 : vector<8x128xi32>
    %c0_4 = arith.constant 0 : index
    %c0_5 = arith.constant 0 : index
    %10 = vector.load %arg12[%c0_4, %c0_5] : memref<8x1xf32, #tpu.memory_space<vmem>>, vector<8x1xf32>
    %c0_6 = arith.constant 0 : index
    %c0_7 = arith.constant 0 : index
    %11 = vector.load %arg6[%c0_6, %c0_7] : memref<8x1xi32, #tpu.memory_space<vmem>>, vector<8x1xi32>
    %12 = vector.broadcast %11 : vector<8x1xi32> to vector<8x128xi32>
    %13 = arith.cmpi eq, %9, %12 : vector<8x128xi32>
    %cst_8 = arith.constant 0.000000e+00 : f32
    %14 = vector.broadcast %cst_8 : f32 to vector<8x128xf32>
    %15 = arith.select %13, %5, %14 : vector<8x128xi1>, vector<8x128xf32>
    %cst_9 = arith.constant dense<0.000000e+00> : vector<8xf32>
    %16 = vector.multi_reduction <add>, %15, %cst_9 [1] : vector<8x128xf32> to vector<8xf32>
    %17 = vector.shape_cast %16 : vector<8xf32> to vector<8x1xf32>
    %18 = arith.addf %10, %17 : vector<8x1xf32>
    %c0_10 = arith.constant 0 : index
    %c0_11 = arith.constant 0 : index
    %19 = vector.load %arg12[%c0_10, %c0_11] : memref<8x1xf32, #tpu.memory_space<vmem>>, vector<8x1xf32>
    tpu.vector_store %arg12[%c0_10, %c0_11], %18 {strides = array<i32>} : memref<8x1xf32, #tpu.memory_space<vmem>>, vector<8x1xf32>,
    %c0_12 = arith.constant 0 : index
    %c0_13 = arith.constant 0 : index
    %20 = vector.load %arg10[%c0_12, %c0_13] : memref<8x1xf32, #tpu.memory_space<vmem>>, vector<8x1xf32>
    %cst_14 = arith.constant dense<0xFF800000> : vector<8xf32>
    %21 = vector.multi_reduction <maximumf>, %5, %cst_14 [1] : vector<8x128xf32> to vector<8xf32>
    %22 = vector.shape_cast %21 : vector<8xf32> to vector<8x1xf32>
    %23 = arith.maximumf %20, %22 : vector<8x1xf32>
    %24 = vector.broadcast %23 : vector<8x1xf32> to vector<8x128xf32>
    %25 = arith.subf %5, %24 : vector<8x128xf32>
    %26 = math.exp %25 : vector<8x128xf32>
    %c0_15 = arith.constant 0 : index
    %c0_16 = arith.constant 0 : index
    %27 = vector.load %arg11[%c0_15, %c0_16] : memref<8x1xf32, #tpu.memory_space<vmem>>, vector<8x1xf32>
    %28 = arith.subf %20, %23 : vector<8x1xf32>
    %29 = math.exp %28 : vector<8x1xf32>
    %30 = arith.mulf %27, %29 : vector<8x1xf32>
    %cst_17 = arith.constant dense<0.000000e+00> : vector<8xf32>
    %31 = vector.multi_reduction <add>, %26, %cst_17 [1] : vector<8x128xf32> to vector<8xf32>
    %32 = vector.shape_cast %31 : vector<8xf32> to vector<8x1xf32>
    %33 = arith.addf %30, %32 : vector<8x1xf32>
    %c0_18 = arith.constant 0 : index
    %c0_19 = arith.constant 0 : index
    %34 = vector.load %arg11[%c0_18, %c0_19] : memref<8x1xf32, #tpu.memory_space<vmem>>, vector<8x1xf32>
    tpu.vector_store %arg11[%c0_18, %c0_19], %33 {strides = array<i32>} : memref<8x1xf32, #tpu.memory_space<vmem>>, vector<8x1xf32>,
    %c0_20 = arith.constant 0 : index
    %c0_21 = arith.constant 0 : index
    %35 = vector.load %arg10[%c0_20, %c0_21] : memref<8x1xf32, #tpu.memory_space<vmem>>, vector<8x1xf32>
    tpu.vector_store %arg10[%c0_20, %c0_21], %23 {strides = array<i32>} : memref<8x1xf32, #tpu.memory_space<vmem>>, vector<8x1xf32>,
    %c1_i32 = arith.constant 1 : i32
    %36 = arith.cmpi eq, %arg1, %c1_i32 : i32
    %37 = arith.extui %36 : i1 to i32
    %c0_i32_22 = arith.constant 0 : i32
    %38 = arith.cmpi ne, %37, %c0_i32_22 : i32
    scf.if %38 {
      %c0_23 = arith.constant 0 : index
      %c0_24 = arith.constant 0 : index
      %39 = vector.load %arg10[%c0_23, %c0_24] : memref<8x1xf32, #tpu.memory_space<vmem>>, vector<8x1xf32>
      %c0_25 = arith.constant 0 : index
      %c0_26 = arith.constant 0 : index
      %40 = vector.load %arg11[%c0_25, %c0_26] : memref<8x1xf32, #tpu.memory_space<vmem>>, vector<8x1xf32>
      %41 = math.log %40 : vector<8x1xf32>
      %42 = arith.addf %39, %41 : vector<8x1xf32>
      %c0_27 = arith.constant 0 : index
      %c0_28 = arith.constant 0 : index
      %43 = vector.load %arg12[%c0_27, %c0_28] : memref<8x1xf32, #tpu.memory_space<vmem>>, vector<8x1xf32>
      %44 = arith.subf %42, %43 : vector<8x1xf32>
      %c0_29 = arith.constant 0 : index
      %c0_30 = arith.constant 0 : index
      %45 = vector.load %arg7[%c0_29, %c0_30] : memref<8x1xf32, #tpu.memory_space<vmem>>, vector<8x1xf32>
      %46 = arith.mulf %44, %45 : vector<8x1xf32>
      %cst_31 = arith.constant dense<0.000000e+00> : vector<1xf32>
      %47 = vector.multi_reduction <add>, %46, %cst_31 [0] : vector<8x1xf32> to vector<1xf32>
      %48 = vector.shape_cast %47 : vector<1xf32> to vector<1x1xf32>
      %49 = tpu.iota {dimensions = array<i32: 0>} : vector<8x128xi32>
      %50 = tpu.iota {dimensions = array<i32: 1>} : vector<8x128xi32>
      %c0_i32_32 = arith.constant 0 : i32
      %51 = vector.broadcast %c0_i32_32 : i32 to vector<8x128xi32>
      %52 = arith.cmpi eq, %49, %51 : vector<8x128xi32>
      %c0_i32_33 = arith.constant 0 : i32
      %53 = vector.broadcast %c0_i32_33 : i32 to vector<8x128xi32>
      %54 = arith.cmpi eq, %50, %53 : vector<8x128xi32>
      %55 = arith.andi %52, %54 : vector<8x128xi1>
      %cst_34 = arith.constant 0.000000e+00 : f32
      %56 = vector.shape_cast %48 : vector<1x1xf32> to vector<1x1xf32>
      %57 = vector.broadcast %56 : vector<1x1xf32> to vector<8x128xf32>
      %58 = vector.broadcast %cst_34 : f32 to vector<8x128xf32>
      %59 = arith.select %55, %57, %58 : vector<8x128xi1>, vector<8x128xf32>
      %c0_35 = arith.constant 0 : index
      %c0_36 = arith.constant 0 : index
      %c0_37 = arith.constant 0 : index
      %60 = vector.load %arg8[%c0_35, %c0_36, %c0_37] : memref<1x8x128xf32, #tpu.memory_space<vmem>>, vector<1x8x128xf32>
      %61 = vector.shape_cast %60 : vector<1x8x128xf32> to vector<8x128xf32>
      %62 = vector.shape_cast %59 : vector<8x128xf32> to vector<1x8x128xf32>
      tpu.vector_store %arg8[%c0_35, %c0_36, %c0_37], %62 {strides = array<i32>} : memref<1x8x128xf32, #tpu.memory_space<vmem>>, vector<1x8x128xf32>,
    } else {
    }
    return
  }
  func.func @transform_0(%arg0: i32, %arg1: i32) -> (i32, i32) {
    %c0_i32 = arith.constant 0 : i32
    %c0_i32_0 = arith.constant 0 : i32
    return %arg0, %c0_i32 : i32, i32
  }
  func.func @transform_1(%arg0: i32, %arg1: i32) -> (i32, i32) {
    %c0_i32 = arith.constant 0 : i32
    %c0_i32_0 = arith.constant 0 : i32
    %c0_i32_1 = arith.constant 0 : i32
    return %c0_i32, %c0_i32_0 : i32, i32
  }
  func.func @transform_2(%arg0: i32, %arg1: i32) -> (i32, i32) {
    %c0_i32 = arith.constant 0 : i32
    %c0_i32_0 = arith.constant 0 : i32
    %c0_i32_1 = arith.constant 0 : i32
    return %c0_i32, %c0_i32_0 : i32, i32
  }
  func.func @transform_3(%arg0: i32, %arg1: i32) -> (i32, i32) {
    %c0_i32 = arith.constant 0 : i32
    %c0_i32_0 = arith.constant 0 : i32
    return %c0_i32, %arg1 : i32, i32
  }
  func.func @transform_4(%arg0: i32, %arg1: i32) -> (i32, i32) {
    %c0_i32 = arith.constant 0 : i32
    %c0_i32_0 = arith.constant 0 : i32
    return %arg0, %c0_i32 : i32, i32
  }
  func.func @transform_5(%arg0: i32, %arg1: i32) -> (i32, i32) {
    %c0_i32 = arith.constant 0 : i32
    %c0_i32_0 = arith.constant 0 : i32
    return %arg0, %c0_i32 : i32, i32
  }
  func.func @transform_6(%arg0: i32, %arg1: i32) -> (i32, i32, i32) {
    %c0_i32 = arith.constant 0 : i32
    %c0_i32_0 = arith.constant 0 : i32
    %c0_i32_1 = arith.constant 0 : i32
    return %arg0, %c0_i32, %c0_i32_0 : i32, i32, i32
  }
}

</mosaic_0001>

<bundles_post_ra>
// kernel: tpu_custom_call.1
= control target key start
LH: loop header
LB: loop body
LE: loop exit
PB: predicated region body
PF: predicated region fallthrough
CT: control target
= control target key end

     0   :  { %s1445_s0 = inlined_call_operand.hbm [shape: f32[16,32], index: 0, kind: input, shape index: {}]   ;;  %s1446_s1 = inlined_call_operand.vmem [shape: f32[32,32], index: 1, kind: input, shape index: {}]   ;;  %s1447_s2 = inlined_call_operand.vmem [shape: f32[1,32], index: 2, kind: input, shape index: {}]   ;;  %s1448_s3 = inlined_call_operand.hbm [shape: f32[32,256], index: 3, kind: input, shape index: {}]   ;;  %s1449_s4 = inlined_call_operand.vmem [shape: s32[16,1], index: 4, kind: input, shape index: {}]   ;;  %s1450_s5 = inlined_call_operand.vmem [shape: f32[16,1], index: 5, kind: input, shape index: {}]   ;;  %s1451_s6 = inlined_call_operand.hbm [shape: f32[2,8,128], index: 6, kind: output, shape index: {}]  }
   0x1   :  { %1461 = sst [smem:[#allocation22_spill]] %s1445_s0 }
   0x2   :  { %1462 = sst [smem:[#allocation23_spill]] %s1451_s6 }
   0x3   :  { %11 = vsyncpa [#allocation7], 0 }
   0x4   :  { %13 = vsyncpa [#allocation7 + $0x1], 0 }
   0x5   :  { %14 = vsyncpa [#allocation10], 0 }
   0x6   :  { %16 = vsyncpa [#allocation10 + $0x1], 0 }
   0x7   :  { %17 = vsyncpa [#allocation8], 0 }
   0x8   :  { %19 = vsyncpa [#allocation8 + $0x1], 0  ;;  %s1154_s21 = smov 0   ;;  %s1156_s22 = smov 0  }
   0x9   :  { %s1158_s23 = smov 0   ;;  %s1160_s24 = smov 0  }
   0xa   :  { %s1162_s25 = smov 0   ;;  %s1164_s26 = smov 0  }
   0xb   :  { %s1166_s27 = smov 0   ;;  %s1168_s28 = smov 0  }
   0xc   :  { %s1170_s29 = smov 0   ;;  %s1172_s30 = smov 0  }
   0xd   :  { %s1174_s7 = smov 0  }
   0xe LB: > { %1463 = sst [smem:[#allocation15_spill]] %s1076_s24  ;;  %s740_s8 = sadd.s32 4294967295, %s1104_s7   ;;  %s1104_s7 = sphi %s1174_s7, %s25_s7   ;;  %s1100_s30 = sphi %s1172_s30, %s1492_s30   ;;  %s1096_s29 = sphi %s1170_s29, %s1491_s29   ;;  %s1092_s28 = sphi %s1168_s28, %s1490_s28   ;;  %s1088_s27 = sphi %s1166_s27, %s1489_s27   ;;  %s1084_s26 = sphi %s1164_s26, %s1498_s26   ;;  %s1080_s25 = sphi %s1162_s25, %s1497_s25   ;;  %s1076_s24 = sphi %s1160_s24, %s1496_s24   ;;  %s1072_s23 = sphi %s1158_s23, %s1495_s23   ;;  %s1068_s22 = sphi %s1156_s22, %s1494_s22   ;;  %s1064_s21 = sphi %s1154_s21, %s1493_s21  }
   0xf   : > { %1464 = sst [smem:[#allocation16_spill]] %s1096_s29  ;;  %s741_s9 = sadd.s32 4294967294, %s1104_s7  }
  0x10   : > { %1465 = sst [smem:[#allocation17_spill]] %s1100_s30  ;;  %s34_s10 = sadd.s32 1, %s1096_s29 }
  0x11   : > { %s37_s11 = sadd.s32 1, %s1100_s30  ;;  %p35_p0 = scmp.ge.s32.totalorder %s34_s10, 2 }
  0x12   : > { %s44_s12 = sadd.s32 1, %s1084_s26  ;;  %p51_p1 = scmp.ne.s32.totalorder %s1084_s26, %s1080_s25 }
  0x13   : > { %p52_p2 = scmp.eq.s32.totalorder %s1104_s7, 0  ;;  %s1500_s10 = smov (%p35_p0, %s34_s10), 0 }
  0x14   : > { %1466 = sst [smem:[#allocation18_spill]] %s1500_s10  ;;  %s1502_s11 = smov (!%p35_p0, %s37_s11), %s1100_s30 }
  0x15   : > { %p1225_p3 = por %p52_p2, %p51_p1  ;;  %p1454_p4 = scmp.ne.s32.totalorder %s1080_s25, %s1076_s24 }
  0x16   : > { %p39_p5 = scmp.ge.s32.totalorder %s1502_s11, 2  ;;  %p1231_p6 = scmp.eq.s32.totalorder %s740_s8, 0 }
  0x17   : > { %s109_s15 = ssub.s32 %s1096_s29, %s1500_s10  ;;  %s112_s16 = sadd.s32 1, %s1072_s23 }
  0x18   : > { %s1504_s11 = smov (%p39_p5, %s1502_s11), 0  ;;  %p1245_p7 = por %p1231_p6, %p1454_p4 }
  0x19   : > { %1469 = sst [smem:[#allocation19_spill]] %s1504_s11  ;;  %p110_p8 = scmp.eq.s32.totalorder %s109_s15, 0 }
  0x1a   : > { %s41_s18 = ssub.s32 %s1100_s30, %s1504_s11  ;;  %p119_p9 = scmp.ne.s32.totalorder %s1072_s23, %s1068_s22 }
  0x1b   : > { %p42_p10 = scmp.eq.s32.totalorder %s41_s18, 0  ;;  %p125_p11 = scmp.ne.s32.totalorder %s1068_s22, %s1064_s21 }
  0x1c   : > { %s1256_s19 = scalar_select %p110_p8, %s1072_s23, %s112_s16  }
  0x1d   : > { %s1259_s20 = scalar_select %p42_p10, %s1084_s26, %s44_s12  }
  0x1e   : > { %1471 = sst [smem:[#allocation20_spill]] %s1256_s19  ;;  %p1263_p12 = por %p119_p9, %p52_p2 }
  0x1f   : > { %1472 = sst [smem:[#allocation21_spill]] %s1259_s20  ;;  %p1269_p13 = por %p125_p11, %p1231_p6 }
  0x20   : > { %p201_p0 = scmp.eq.s32.totalorder %s740_s8, 3  ;;  %p207_p5 = scmp.eq.s32.totalorder %s741_s9, 3 }
  0x21   : > { %s1474_s6 = scalar_select %p1269_p13, 1, 0 }
  0x22   : > { %p813_p4 = scmp.lt.s32.totalorder %s1104_s7, 4  ;;  %p1277_p8 = por %p201_p0, %p51_p1 }
  0x23   : > { %p1476_p10 = scmp.ne.s32.totalorder %s1080_s25, %s1076_s24  ;;  %s233_s14 = sand.u32 1, %s1084_s26  }
  0x24   : > { %s1475_s21 = scalar_select %p1277_p8, 1, 0 }
  0x25   : > { %p1284_p2 = por %p207_p5, %p1476_p10  ;;  %s745_s15 = sshll.u32 %s1100_s30, 7 }
  0x26   : > { %s744_s16 = sshll.u32 %s233_s14, 3  ;;  %s1478_s0 = sld [smem:[#allocation22_spill]] }
  0x27   : > { %s1477_s12 = scalar_select %p1284_p2, 1, 0 }
  0x28   : > { %s237_s8 = scalar_lea.vmem [#allocation6], %s744_s16  ;;  %p1295_p6 = pnand %p813_p4, %p1225_p3 }
  0x29   : > { %s244_s9 = sshll.u32 %s237_s8, 4  ;;  %p1301_p1 = pnand %p813_p4, %p1263_p12  ;;  %s245_s9 = int_to_ptr.vmem [resolvable:$true] %s244_s9 }
  0x2a   : > { %p748_p9 = scmp.ge.s32.totalorder %s1104_s7, 1  ;;  %s234_s30 = scalar_lea.sflag [#allocation7], %s233_s14 }
  0x2b   : > { %p926_p11 = pneg %p1295_p6  ;;  %s937_s11 = scalar_lea.vmem %s245_s9, 128 }
  0x2c   : > { %s242_s20 = scalar_lea.hbm %s1478_s0, %s745_s15  ;;  %p938_p0 = scmp.ne.s32.totalorder %s245_s9, %s937_s11 }
  0x2d   : > { %s1106_s13 = smov [#allocation6]  }
  0x2e   : > { %p940_p5 = pnand %p938_p0, %p926_p11  ;;  %s942_s15 = sshll.u32 %s1106_s13, 4  ;;  %s943_s15 = int_to_ptr.vmem [resolvable:$false] %s942_s15 }
  0x2f   : > { %s944_s16 = scalar_lea.vmem %s943_s15, 256  ;;  %p945_p3 = scmp.lt.s32.totalorder %s245_s9, %s943_s15 }
  0x30   : > { %p941_p10 = pneg %p940_p5  ;;  %p946_p2 = scmp.lt.s32.totalorder %s944_s16, %s937_s11 }
  0x32   : > { %p947_p8 = por %p946_p2, %p945_p3 }
  0x34   : > { %p948_p13 = pnand %p947_p8, %p941_p10 }
  0x36   : > { %951 = shalt.err (!%p948_p13)
}
  0x37   : > { %805 = dma.hbm_to_vmem [thread:$0]  (!%p1295_p6), %s242_s20, 128, %s245_s9, %s234_s30  }
  0x38   : > { %p283_p4 = scmp.lt.s32.totalorder %s1104_s7, 5  ;;  %s251_s10 = sand.u32 1, %s1072_s23  }
  0x39   : > { %s747_s14 = sshll.u32 %s1096_s29, 7  ;;  %s746_s8 = sshll.u32 %s251_s10, 5 }
  0x3a   : > { %p1315_p12 = pnand %p748_p9, %p283_p4  ;;  %s260_s15 = scalar_lea.hbm %s1448_s3, %s747_s14 }
  0x3b   : > { %s255_s19 = scalar_lea.vmem [#allocation9], %s746_s8  ;;  %s252_s0 = scalar_lea.sflag [#allocation10], %s251_s10 }
  0x3c   : > { %s261_s16 = sshll.u32 %s255_s19, 4  ;;  %p954_p13 = pneg %p1301_p1  ;;  %s262_s16 = int_to_ptr.vmem [resolvable:$true] %s261_s16 }
  0x3d   : > { %s965_s30 = scalar_lea.vmem %s262_s16, 512  ;;  %s1107_s20 = smov [#allocation9]  }
  0x3e   : > { %p966_p8 = scmp.ne.s32.totalorder %s262_s16, %s965_s30  ;;  %s970_s9 = sshll.u32 %s1107_s20, 4  ;;  %s971_s9 = int_to_ptr.vmem [resolvable:$false] %s970_s9 }
  0x3f   : > { %s972_s29 = scalar_lea.vmem %s971_s9, 1024  ;;  %p973_p9 = scmp.lt.s32.totalorder %s262_s16, %s971_s9 }
  0x40   : > { %p968_p2 = pnand %p966_p8, %p954_p13  ;;  %p974_p11 = scmp.lt.s32.totalorder %s972_s29, %s965_s30 }
  0x42   : > { %p969_p6 = pneg %p968_p2  ;;  %p975_p0 = por %p974_p11, %p973_p9 }
  0x44   : > { %p976_p5 = pnand %p975_p0, %p969_p6 }
  0x46   : > { %979 = shalt.err (!%p976_p5)
}
  0x47   : > { %s1108_s14 = smov 256   ;;  %s1109_s8 = smov 128  }
  0x48   : > { %s1110_s11 = smov 8   ;;  %287 = sbr.rel (%p1315_p12) target bundleno = 1127 (0x467), region = 44 }
  0x49   : > { %808 = dma.hbm_to_vmem [thread:$0]  (!%p1301_p1), %s260_s15, 512, %s262_s16, %s252_s0, %s1108_s14, %s1109_s8, %s1110_s11  }
  0x4a   : > { %s1329_s10 = sand.u32 (!%p1315_p12), 1, %s1080_s25  }
  0x4b   : > { %s749_s13 = sshll.u32 (!%p1315_p12), %s1329_s10, 3  ;;  %s290_s29 = scalar_lea.sflag (!%p1315_p12), [#allocation7], %s1329_s10 }
  0x4c   : > { %s1333_s19 = scalar_lea.vmem (!%p1315_p12), [#allocation6], %s749_s13 }
  0x4d   : > { %1051 = dma.done.wait (%p1245_p7), %s290_s29, 128  }
  0x4e   : > { %1053 = vsyncadd (%p1245_p7), %s290_s29, 4294967168  ;;  %s298_s0 = sand.u32 1, %s1068_s22   ;;  %p1482_p1 = scmp.ne.s32.totalorder %s1474_s6, 0 }
  0x4f   : > { %s750_s24 = sshll.u32 %s298_s0, 5  ;;  %s299_s18 = scalar_lea.sflag [#allocation10], %s298_s0 }
  0x50   : > { %s1340_s15 = scalar_lea.vmem [#allocation9], %s750_s24 }
  0x51   : > { %1055 = dma.done.wait (%p1482_p1), %s299_s18, 512  }
  0x52   : > { %1057 = vsyncadd (%p1482_p1), %s299_s18, 4294966784  ;;  %p344_p10 = scmp.lt.s32.totalorder %s1092_s28, 1  ;;  %s1358_s29 = scalar_lea.vmem [#allocation11], %s749_s13 }
  0x53   : > { %p754_p7 = scmp.ne.s32.totalorder %s1088_s27, 0 }
  0x54   : > { %s345_s16 = scalar_select %p344_p10, %s1092_s28, 1 }
  0x55   : > { %355 = sbr.rel (%p754_p7) target bundleno = 309 (0x135), region = 56 }
  0x56   : > { %s752_s30 = sshll.u32 %s345_s16, 3 }
  0x57   : > { %s1351_s9 = scalar_lea.vmem %s1449_s4, %s752_s30  ;;  %s1356_s11 = scalar_lea.vmem %s1450_s5, %s752_s30 }
  0x5a   : > { %vm444_vm0 = vcmask 7168   ;;  %v360_v0 = vld [vmem:[%s1446_s1 + $0x18] sm:$0xff]  ;;  %v1111_v1 = vmov 0.0   ;;  %v1112_v2 = vmov -inf   ;;  %v359_v3 = vld [vmem:[%s1446_s1 + $0x10] sm:$0xff]  ;;  %vm1113_vm1 = vmmov 0  }
  0x5b   : > { %774 = vmatprep.subr.mxu0 %v1111_v1  ;;  %445 = vst.msk [vmem:[#allocation3] sm:$0xff] %vm444_vm0, %v1112_v2  ;;  %446 = vst.msk [vmem:[#allocation4] sm:$0xff] %vm444_vm0, %v1111_v1  ;;  %782 = vmatprep.mubr.msk.f32.mxu0 %vm1113_vm1, %v1111_v1  ;;  %v358_v4 = vld [vmem:[%s1446_s1 + $0x8] sm:$0xff]  ;;  %v357_v5 = vld [vmem:[%s1446_s1] sm:$0xff]  ;;  %vm368_vm2 = vcmask 261120  }
  0x5c   : > { %447 = vst.msk [vmem:[#allocation5] sm:$0xff] %vm444_vm0, %v1111_v1  ;;  %775 = vmatpush3.msra.mxu0 %v360_v0  ;;  %v356_v6 = vld [vmem:[%s1333_s19] sm:$0xff] }
  0x5d   : > { %776 = vmatprep.subr.mxu0 %v1111_v1  ;;  %v755_v7 = vld [vmem:[%s1447_s2] ss:$0 sm:$0xff] }
  0x5e   : > { %777 = vmatpush3.msra.mxu0 %v359_v3 }
  0x5f   : > { %778 = vmatprep.subr.mxu0 %v1111_v1 }
  0x60   : > { %779 = vmatpush3.msra.mxu0 %v358_v4 }
  0x61   : > { %780 = vmatprep.subr.mxu0 %v1111_v1 }
  0x62   : > { %781 = vmatpush3.msra.mxu0 %v357_v5 }
  0x63   : > { %783 = vmatmul.mubr.msk.f32.vlgmr.msra.gmra.mxu0 %vm368_vm2, %v356_v6 }
 0x123   : > { %v438_v8 = vpop.f32.mrf.mxu0 }
 0x124   : > { %v439_v9 = vadd.f32 %v755_v7, %v438_v8 }
 0x125   : > { %v784_v10 = vpop.f32.mrf.mxu0 }
 0x126   : > { %913 = vtanh.f32 %v439_v9 }
 0x133   : > { %v914_v11 = vpop.eup %913 }
 0x134   : > { %443 = vst.msk [vmem:[#allocation2] sm:$0xff] %vm368_vm2, %v914_v11 }
 0x135 PF: > { %v452_v12 = vld [vmem:[%s1340_s15 + $0x18] sm:$0xff]  ;;  %v1114_v13 = vmov 0.0   ;;  %v451_v14 = vld [vmem:[%s1340_s15 + $0x10] sm:$0xff]  ;;  %vm1115_vm3 = vmmov 0   ;;  %v1116_v16 = vmov 0   ;;  %v450_v17 = vld [vmem:[%s1340_s15 + $0x8] sm:$0xff]  ;;  %v527_v20 = vlaneseq }
 0x136   : > { %785 = vmatprep.subr.mxu0 %v1114_v13  ;;  %793 = vmatprep.mubr.msk.f32.mxu0 %vm1115_vm3, %v1114_v13  ;;  %v533_v15 = vld [vmem:[%s1351_s9] sm:$0xff]  ;;  %v449_v18 = vld [vmem:[%s1340_s15] sm:$0xff]  ;;  %vm453_vm4 = vcmask 261120   ;;  %s758_s19 = sshll.u32 %s1088_s27, 7  ;;  %v544_v28 = vld [vmem:[#allocation3] sm:$0xff]  ;;  %vm542_vm6 = vcmask 7168  }
 0x137   : > { %786 = vmatpush3.msra.mxu0 %v452_v12  ;;  %916 = vset.pattern.permute.xlu1 %v1116_v16  ;;  %v528_v21 = vand.u32 127, %v527_v20  ;;  %v530_v22 = vstv %s758_s19  ;;  %v532_v29 = vld [vmem:[#allocation5] sm:$0xff]  ;;  %v556_v41 = vld [vmem:[#allocation4] sm:$0xff]  ;;  %p759_p3 = scmp.ne.s32.totalorder %s1088_s27, 1 }
 0x138   : > { %787 = vmatprep.subr.mxu0 %v1114_v13  ;;  %535 = vperm.xlu1 %916, %v533_v15  }
 0x139   : > { %788 = vmatpush3.msra.mxu0 %v451_v14  ;;  %915 = vset.pattern.permute.xlu0 %v1116_v16  ;;  %v531_v23 = vadd.s32 %v530_v22, %v528_v21 }
 0x13a   : > { %789 = vmatprep.subr.mxu0 %v1114_v13 }
 0x13b   : > { %790 = vmatpush3.msra.mxu0 %v450_v17  ;;  %v448_v19 = vld [vmem:[#allocation2] sm:$0xff] }
 0x13c   : > { %791 = vmatprep.subr.mxu0 %v1114_v13 }
 0x13d   : > { %792 = vmatpush3.msra.mxu0 %v449_v18 }
 0x13e   : > { %794 = vmatmul.mubr.msk.f32.vlgmr.msra.gmra.mxu0 %vm453_vm4, %v448_v19 }
 0x1b3   : > { %v536_v24 = vpop.permute.xlu1 %535 }
 0x1b4   : > { %vm537_vm5 = vcmp.eq.s32.totalorder %v531_v23, %v536_v24 }
 0x1fe   : > { %v523_v25 = vpop.f32.mrf.mxu0 }
 0x1ff   : > { %545 = vmax.xlane.f32.xlu0 %v523_v25  ;;  %v538_v26 = vsel %vm537_vm5, %v523_v25, 0.0 }
 0x200   : > { %539 = vadd.xlane.f32.xlu1 %v538_v26  ;;  %v795_v27 = vpop.f32.mrf.mxu0 }
 0x288   : > { %v546_v30 = vpop.xlane.xlu0 %545 }
 0x289   : > { %v547_v31 = vmax.f32 %v544_v28, %v546_v30  ;;  %v540_v32 = vpop.xlane.xlu1 %539 }
 0x28a   : > { %v541_v33 = vadd.f32 %v540_v32, %v532_v29 }
 0x28b   : > { %v557_v34 = vsub.f32 %v544_v28, %v547_v31  ;;  %565 = vst.msk [vmem:[#allocation3] sm:$0xff] %vm542_vm6, %v547_v31  ;;  %550 = vperm.xlu0 %915, %v547_v31  }
 0x28c   : > { %543 = vst.msk [vmem:[#allocation5] sm:$0xff] %vm542_vm6, %v541_v33 }
 0x28d   : > { %v558_v39 = vmul.f32 1.442695, %v557_v34 }
 0x306   : > { %v551_v35 = vpop.permute.xlu0 %550 }
 0x307   : > { %v553_v36 = vsub.f32 %v523_v25, %v551_v35 }
 0x309   : > { %v554_v37 = vmul.f32 1.442695, %v553_v36 }
 0x30b   : > { %917 = vpow2.f32 %v554_v37 }
 0x30c   : > { %919 = vpow2.f32 %v558_v39 }
 0x318   : > { %v918_v38 = vpop.eup %917 }
 0x319   : > { %561 = vadd.xlane.f32.xlu1 %v918_v38  ;;  %v920_v40 = vpop.eup %919 }
 0x31a   : > { %v560_v42 = vmul.f32 %v920_v40, %v556_v41 }
 0x3a1   : > { %569 = sbr.rel (%p759_p3) target bundleno = 1102 (0x44e), region = 60 }
 0x3a2   : > { %v562_v43 = vpop.xlane.xlu1 %561 }
 0x3a3   : > { %v563_v44 = vadd.f32 %v562_v43, %v560_v42 }
 0x3a5   : > { %564 = vst.msk [vmem:[#allocation4] sm:$0xff] %vm542_vm6, %v563_v44 }
 0x3a6   : > { %v1117_v46 = vmov 0   ;;  %v570_v48 = vld [vmem:[#allocation3] sm:$0xff]  ;;  %v575_v50 = vld [vmem:[#allocation5] sm:$0xff]  ;;  %v577_v52 = vld [vmem:[%s1356_s11] sm:$0xff]  ;;  %v587_v62 = vshrl.u32 %v527_v20, 7  ;;  %vm589_vm8 = vcmp.eq.s32.totalorder %v528_v21, 0 }
 0x3a7   : > { %921 = vset.pattern.permute.xlu0 %v1117_v46 }
 0x3a8   : > { %vm588_vm7 = vcmp.eq.s32.totalorder %v587_v62, 0 }
 0x3a9   : > { %vm590_vm9 = vmand %vm588_vm7, %vm589_vm8 }
 0x3ac   : > { %v571_v45 = vld [vmem:[#allocation4] sm:$0xff] }
 0x3ad   : > { %922 = vlog2.f32 %v571_v45 }
 0x3ba   : > { %v923_v47 = vpop.eup %922 }
 0x3bb   : > { %v573_v49 = vmul.f32 0.6931472, %v923_v47 }
 0x3bd   : > { %v574_v51 = vadd.f32 %v573_v49, %v570_v48 }
 0x3bf   : > { %v576_v53 = vsub.f32 %v574_v51, %v575_v50 }
 0x3c1   : > { %v578_v54 = vmul.f32 %v577_v52, %v576_v53 }
 0x3c3   : > { %v579_v55 = vsel %vm542_vm6, %v578_v54, 0.0 }
 0x3c4   : > { %v580_v56 = vrot.slane %v579_v55, 4 }
 0x3c6   : > { %v581_v57 = vadd.f32 %v580_v56, %v579_v55 }
 0x3c8   : > { %v582_v58 = vrot.slane %v581_v57, 2 }
 0x3ca   : > { %v583_v59 = vadd.f32 %v582_v58, %v581_v57 }
 0x3cc   : > { %v584_v60 = vrot.slane %v583_v59, 1 }
 0x3ce   : > { %v585_v61 = vadd.f32 %v584_v60, %v583_v59 }
 0x3d0   : > { %593 = vperm.xlu0 %921, %v585_v61  }
 0x44b   : > { %v594_v63 = vpop.permute.xlu0 %593 }
 0x44c   : > { %v596_v0 = vsel %vm590_vm9, %v594_v63, 0.0 }
 0x44d   : > { %597 = vst [vmem:[%s1358_s29] sm:$0xff] %v596_v0 }
 0x44e PF: > { %s761_s27 = sshll.u32 %s1092_s28, 7  ;;  %s1483_s8 = sld [smem:[#allocation23_spill]] }
 0x44f   : > { %s612_s6 = sshll.u32 %s1358_s29, 4  ;;  %s599_s0 = scalar_lea.sflag [#allocation8], %s1329_s10  ;;  %s613_s6 = int_to_ptr.vmem [resolvable:$true] %s612_s6 }
 0x450   : > { %s980_s24 = scalar_lea.vmem %s613_s6, 128  ;;  %p1484_p12 = scmp.ne.s32.totalorder %s1475_s21, 0 }
 0x451   : > { %p981_p4 = scmp.ne.s32.totalorder %s613_s6, %s980_s24  ;;  %s1118_s18 = smov [#allocation11]  }
 0x452   : > { %s984_s13 = sshll.u32 %s1118_s18, 4  ;;  %s985_s13 = int_to_ptr.vmem [resolvable:$false] %s984_s13 }
 0x453   : > { %p982_p13 = pnand %p981_p4, %p1484_p12  ;;  %s986_s16 = scalar_lea.vmem %s985_s13, 256 }
 0x454   : > { %s610_s11 = scalar_lea.hbm %s1483_s8, %s761_s27  ;;  %p987_p2 = scmp.lt.s32.totalorder %s613_s6, %s985_s13 }
 0x455   : > { %p983_p8 = pneg %p982_p13  ;;  %p988_p6 = scmp.lt.s32.totalorder %s986_s16, %s980_s24 }
 0x457   : > { %p989_p9 = por %p988_p6, %p987_p2 }
 0x459   : > { %p990_p11 = pnand %p989_p9, %p983_p8 }
 0x45b   : > { %993 = shalt.err (!%p990_p11)
}
 0x45c   : > { %s994_s28 = scalar_lea.hbm %s610_s11, 128  ;;  %s998_s30 = scalar_lea.hbm %s1483_s8, 256 }
 0x45d   : > { %p995_p0 = scmp.ne.s32.totalorder %s610_s11, %s994_s28  ;;  %p999_p10 = scmp.lt.s32.totalorder %s610_s11, %s1483_s8 }
 0x45e   : > { %p1000_p7 = scmp.lt.s32.totalorder %s998_s30, %s994_s28 }
 0x45f   : > { %p996_p5 = pnand %p995_p0, %p1484_p12 }
 0x460   : > { %p1001_p3 = por %p1000_p7, %p999_p10 }
 0x461   : > { %p997_p1 = pneg %p996_p5 }
 0x463   : > { %p1002_p4 = pnand %p1001_p3, %p997_p1 }
 0x465   : > { %1005 = shalt.err (!%p1002_p4)
}
 0x466   : > { %800 = dma.vmem_to_hbm [thread:$0]  (%p1484_p12), %s613_s6, 128, %s610_s11, %s599_s0  }
 0x467 PF: > { %s1485_s14 = sld [smem:[#allocation15_spill]]  ;;  %p814_p13 = scmp.ge.s32.totalorder %s1104_s7, 2 }
 0x468   : > { %p1486_p8 = scmp.ne.s32.totalorder %s1477_s12, 0 }
 0x46a   : > { %p810_p2 = pnand %p814_p13, %p1486_p8 }
 0x46c   : > { %p811_p6 = pneg %p810_p2 }
 0x46d   : > { %s624_s19 = sand.u32 1, %s1485_s14  }
 0x46e   : > { %s625_s27 = scalar_lea.sflag [#allocation8], %s624_s19 }
 0x46f   : > { %1059 = dma.done.wait (%p811_p6), %s625_s27, 128  }
 0x470   : > { %1061 = vsyncadd (%p811_p6), %s625_s27, 4294967168  ;;  %s25_s7 = sadd.s32 1, %s1104_s7   ;;  %s1487_s15 = sld [smem:[#allocation20_spill]] }
 0x471   : > { %p22_p9 = scmp.ge.s32.totalorder %s25_s7, 6   ;;  %s1488_s9 = sld [smem:[#allocation21_spill]] }
 0x472   : > { %s1489_s27 = sld [smem:[#allocation16_spill]]  ;;  %s1493_s21 = smov %s1068_s22 }
 0x473   : > { %s1490_s28 = sld [smem:[#allocation17_spill]]  ;;  %s1494_s22 = smov %s1072_s23 }
 0x474   : > { %s1491_s29 = sld [smem:[#allocation18_spill]]  ;;  %s1496_s24 = smov %s1080_s25 }
 0x475   : > { %s1492_s30 = sld [smem:[#allocation19_spill]]  ;;  %s1497_s25 = smov %s1084_s26 }
 0x476   : > { %s1495_s23 = smov %s1487_s15  ;;  %24 = sbr.rel (!%p22_p9) target bundleno = 14 (0xe), region = 116 }
 0x477   : > { %s1498_s26 = smov %s1488_s9 }
 0x47b   :  { %630 = vsyncpa [#allocation7], 1 }
 0x47c   :  { %632 = vsyncpa [#allocation7 + $0x1], 1 }
 0x47d   :  { %633 = vsyncpa [#allocation10], 1 }
 0x47e   :  { %635 = vsyncpa [#allocation10 + $0x1], 1 }
 0x47f   :  { %636 = vsyncpa [#allocation8], 1 }
 0x480   :  { %638 = vsyncpa [#allocation8 + $0x1], 1 }

</bundles_post_ra>
